<compile_context>
chip_gen: v7x
topology: tpu7x:2x2x1
jax: 0.10.0
libtpu: 0.0.40
codegen_flags: <defaults>
</compile_context>

<pallas_src>
import jax
import jax.numpy as jnp
from jax import lax
from jax.experimental import pallas as pl
from jax.experimental.pallas import tpu as pltpu

# Problem sizes (small, consistent with the module's forward)
N, C_IN, H, W = 2, 4, 16, 16
C_OUT = 8
K = 3
PAD = 1
STRIDE = 1
EPS = 1e-5

ROWS = N * H * W          # 512  -> lane axis (multiple of 128)
KKC = K * K * C_IN        # 36   -> contraction axis


def conv_bn_relu_kernel(p_ref, w_ref, gb_ref, o_ref):
    # p_ref:  (KKC, ROWS)   = (36, 512)  transposed im2col patches (lane-dense)
    # w_ref:  (C_OUT, KKC)  = (8, 36)    conv weights, transposed
    # gb_ref: (C_OUT, 2)                 column 0 = gamma, column 1 = beta
    # o_ref:  (C_OUT, ROWS) = (8, 512)   lane-dense output (unmasked stores)

    # Convolution as one MXU matmul with f32 accumulation.  Conv bias omitted:
    # it cancels exactly under the training-mode BN mean subtraction below.
    y = jnp.dot(w_ref[...], p_ref[...], preferred_element_type=jnp.float32)

    # BatchNorm2d (training mode): per-out-channel mean / biased variance over
    # all N*H*W positions (lane axis).  Reuse (y - mean) for both the variance
    # and the normalization; fold gamma/rsqrt into a single scale.
    inv_n = 1.0 / y.shape[-1]
    mean = jnp.sum(y, axis=-1, keepdims=True) * inv_n            # (C_OUT, 1)
    yc = y - mean
    var = jnp.sum(yc * yc, axis=-1, keepdims=True) * inv_n       # (C_OUT, 1)

    gb = gb_ref[...]                                             # (C_OUT, 2)
    gamma = gb[:, 0:1]
    beta = gb[:, 1:2]
    scale = gamma * lax.rsqrt(var + EPS)                         # (C_OUT, 1)

    # Affine + ReLU (with_nonlinearity=True)
    o_ref[...] = jnp.maximum(yc * scale + beta, 0.0)


@jax.jit
def conv_block_forward(x_nchw, w_oihw, b, gamma, beta):
    """Pallas ConvBlock forward. x_nchw: (N, C_in, H, W) -> (N, C_out, H, W).

    `b` (the Conv2d bias) is accepted for interface fidelity but intentionally
    unused: training-mode BatchNorm cancels a per-channel conv bias exactly.
    """
    del b  # cancelled by BN mean subtraction (exact, not an approximation)

    # --- layout glue (fused under jit, no compute): transposed im2col ---
    x = jnp.transpose(x_nchw, (0, 2, 3, 1))                      # NHWC
    xp = jnp.pad(x, ((0, 0), (PAD, PAD), (PAD, PAD), (0, 0)))    # (N, H+2, W+2, C_in)

    taps = [xp[:, dy:dy + H, dx:dx + W, :]                       # each (N, H, W, C_in)
            for dy in range(K) for dx in range(K)]
    p = jnp.stack(taps, axis=0)                                  # (K*K, N, H, W, C_in)
    p = jnp.transpose(p, (0, 4, 1, 2, 3))                        # (K*K, C_in, N, H, W)
    patches_t = p.reshape(KKC, ROWS)                             # rows: (ky,kx,c_in), tap-major

    # Weight matrix transposed: (C_out, K*K*C_in), columns (ky, kx, c_in) to match.
    w_t = jnp.transpose(w_oihw, (0, 2, 3, 1)).reshape(C_OUT, KKC)

    # Merge BN affine params into one small input (one DMA instead of three).
    gb = jnp.stack([gamma, beta], axis=-1)                       # (C_OUT, 2)

    out_t = pl.pallas_call(
        conv_bn_relu_kernel,
        out_shape=jax.ShapeDtypeStruct((C_OUT, ROWS), jnp.float32),
        in_specs=[
            pl.BlockSpec(memory_space=pltpu.MemorySpace.VMEM),   # patches^T (36, 512)
            pl.BlockSpec(memory_space=pltpu.MemorySpace.VMEM),   # weights^T (8, 36)
            pl.BlockSpec(memory_space=pltpu.MemorySpace.VMEM),   # gamma/beta (8, 2)
        ],
        out_specs=pl.BlockSpec(memory_space=pltpu.MemorySpace.VMEM),
    )(
        patches_t.astype(jnp.float32),
        w_t.astype(jnp.float32),
        gb.astype(jnp.float32),
    )

    # (C_out, N*H*W) -> (N, C_out, H, W)
    out = out_t.reshape(C_OUT, N, H, W)
    return jnp.transpose(out, (1, 0, 2, 3))


@jax.jit
def conv_block_reference(x_nchw, w_oihw, b, gamma, beta):
    """Pure-JAX reference mirroring the PyTorch forward (training-mode BN)."""
    y = lax.conv_general_dilated(
        x_nchw, w_oihw, window_strides=(STRIDE, STRIDE),
        padding=((PAD, PAD), (PAD, PAD)),
        dimension_numbers=("NCHW", "OIHW", "NCHW"))
    y = y + b[None, :, None, None]
    mean = jnp.mean(y, axis=(0, 2, 3), keepdims=True)
    var = jnp.mean((y - mean) ** 2, axis=(0, 2, 3), keepdims=True)
    y = (y - mean) / jnp.sqrt(var + EPS)
    y = y * gamma[None, :, None, None] + beta[None, :, None, None]
    return jnp.maximum(y, 0.0)


if __name__ == "__main__":
    key = jax.random.PRNGKey(0)
    kx, kw, kb, kg, kbeta = jax.random.split(key, 5)

    # Input (NCHW, like the PyTorch module's conv input)
    x = jax.random.normal(kx, (N, C_IN, H, W), dtype=jnp.float32)

    # Deterministic synthetic parameters (shapes from Conv2d / BatchNorm2d init)
    w_conv = jax.random.normal(kw, (C_OUT, C_IN, K, K), dtype=jnp.float32) * 0.1
    b_conv = jax.random.normal(kb, (C_OUT,), dtype=jnp.float32) * 0.1
    bn_gamma = 1.0 + 0.1 * jax.random.normal(kg, (C_OUT,), dtype=jnp.float32)
    bn_beta = 0.1 * jax.random.normal(kbeta, (C_OUT,), dtype=jnp.float32)

    out = conv_block_forward(x, w_conv, b_conv, bn_gamma, bn_beta)
    out = jax.block_until_ready(out)

    ref = conv_block_reference(x, w_conv, b_conv, bn_gamma, bn_beta)
    ref = jax.block_until_ready(ref)

    assert out.shape == (N, C_OUT, H, W), out.shape
    assert jnp.allclose(out, ref, rtol=1e-4, atol=1e-4), float(jnp.max(jnp.abs(out - ref)))

    print("KERNEL_OK")
</pallas_src>

<mosaic_0001>
module attributes {stable_mosaic.version = 11 : i64} {
  func.func @conv_bn_relu_kernel(%arg0: memref<36x512xf32, #tpu.memory_space<vmem>>, %arg1: memref<8x36xf32, #tpu.memory_space<vmem>>, %arg2: memref<8x2xf32, #tpu.memory_space<vmem>>, %arg3: memref<8x512xf32, #tpu.memory_space<vmem>>) attributes {dimension_semantics = [], scalar_prefetch = 0 : i64, scratch_operands = 0 : i64, tpu.core_type = #tpu.core_type<tc>} {
    %c0 = arith.constant 0 : index
    %c0_0 = arith.constant 0 : index
    %0 = vector.load %arg1[%c0, %c0_0] : memref<8x36xf32, #tpu.memory_space<vmem>>, vector<8x36xf32>
    %c0_1 = arith.constant 0 : index
    %c0_2 = arith.constant 0 : index
    %1 = vector.load %arg0[%c0_1, %c0_2] : memref<36x512xf32, #tpu.memory_space<vmem>>, vector<36x512xf32>
    %cst = arith.constant dense<0.000000e+00> : vector<8x512xf32>
    %2 = tpu.matmul %0, %1, %cst {dimension_numbers = #tpu.dot_dimension_numbers<[1], [0], [0], [1], [0, 0, 1, 1], [], []>} : vector<8x36xf32>, vector<36x512xf32>, vector<8x512xf32> -> vector<8x512xf32>
    %cst_3 = arith.constant dense<0.000000e+00> : vector<8xf32>
    %3 = vector.multi_reduction <add>, %2, %cst_3 [1] : vector<8x512xf32> to vector<8xf32>
    %4 = vector.shape_cast %3 : vector<8xf32> to vector<8x1xf32>
    %cst_4 = arith.constant 0.001953125 : f32
    %5 = vector.broadcast %cst_4 : f32 to vector<8x1xf32>
    %6 = arith.mulf %4, %5 : vector<8x1xf32>
    %7 = vector.broadcast %6 : vector<8x1xf32> to vector<8x512xf32>
    %8 = arith.subf %2, %7 : vector<8x512xf32>
    %9 = arith.mulf %8, %8 : vector<8x512xf32>
    %cst_5 = arith.constant dense<0.000000e+00> : vector<8xf32>
    %10 = vector.multi_reduction <add>, %9, %cst_5 [1] : vector<8x512xf32> to vector<8xf32>
    %11 = vector.shape_cast %10 : vector<8xf32> to vector<8x1xf32>
    %cst_6 = arith.constant 0.001953125 : f32
    %12 = vector.broadcast %cst_6 : f32 to vector<8x1xf32>
    %13 = arith.mulf %11, %12 : vector<8x1xf32>
    %c0_7 = arith.constant 0 : index
    %c0_8 = arith.constant 0 : index
    %14 = vector.load %arg2[%c0_7, %c0_8] : memref<8x2xf32, #tpu.memory_space<vmem>>, vector<8x2xf32>
    %15 = vector.extract_strided_slice %14 {offsets = [0, 0], sizes = [8, 1], strides = [1, 1]} : vector<8x2xf32> to vector<8x1xf32>
    %16 = vector.extract_strided_slice %14 {offsets = [0, 1], sizes = [8, 1], strides = [1, 1]} : vector<8x2xf32> to vector<8x1xf32>
    %cst_9 = arith.constant 9.99999974E-6 : f32
    %17 = vector.broadcast %cst_9 : f32 to vector<8x1xf32>
    %18 = arith.addf %13, %17 : vector<8x1xf32>
    %19 = math.rsqrt %18 : vector<8x1xf32>
    %20 = arith.mulf %15, %19 : vector<8x1xf32>
    %21 = vector.broadcast %20 : vector<8x1xf32> to vector<8x512xf32>
    %22 = arith.mulf %8, %21 : vector<8x512xf32>
    %23 = vector.broadcast %16 : vector<8x1xf32> to vector<8x512xf32>
    %24 = arith.addf %22, %23 : vector<8x512xf32>
    %cst_10 = arith.constant 0.000000e+00 : f32
    %25 = vector.broadcast %cst_10 : f32 to vector<8x512xf32>
    %26 = arith.maximumf %24, %25 : vector<8x512xf32>
    %c0_11 = arith.constant 0 : index
    %c0_12 = arith.constant 0 : index
    %27 = vector.load %arg3[%c0_11, %c0_12] : memref<8x512xf32, #tpu.memory_space<vmem>>, vector<8x512xf32>
    tpu.vector_store %arg3[%c0_11, %c0_12], %26 {strides = array<i32>} : memref<8x512xf32, #tpu.memory_space<vmem>>, vector<8x512xf32>,
    return
  }
}

</mosaic_0001>

<bundles_post_ra>
// kernel: conv_block_forward.1
= control target key start
LH: loop header
LB: loop body
LE: loop exit
PB: predicated region body
PF: predicated region fallthrough
CT: control target
= control target key end

     0   :  { %v278_v3 = vmov 0.0   ;;  %vm39_vm0 = vcmask 1043456   ;;  %vm35_vm1 = vcmask 293888   ;;  %v279_v50 = vmov 0   ;;  %s379_s0 = inlined_call_operand.vmem [shape: f32[36,512], index: 0, kind: input, shape index: {}]   ;;  %s380_s1 = inlined_call_operand.vmem [shape: f32[8,36], index: 1, kind: input, shape index: {}]   ;;  %s381_s2 = inlined_call_operand.vmem [shape: f32[8,2], index: 2, kind: input, shape index: {}]   ;;  %s382_s3 = inlined_call_operand.vmem [shape: f32[8,512], index: 3, kind: output, shape index: {}]  }
   0x1   :  { %v16_v0 = vld [vmem:[%s379_s0 + $0x8] sm:$0xff]  ;;  %v15_v2 = vld [vmem:[%s379_s0] sm:$0xff]  ;;  %116 = vmatprep.mubr.f32.mxu0 %v278_v3  ;;  %187 = vmatprep.mubr.f32.mxu1 %v278_v3  ;;  %v18_v6 = vld [vmem:[%s379_s0 + $0x18] sm:$0xff]  ;;  %v280_v51 = vmov 1  }
   0x2   :  { %v20_v1 = vld [vmem:[%s379_s0 + $0x28] sm:$0xff]  ;;  %v19_v5 = vld [vmem:[%s379_s0 + $0x20] sm:$0xff]  ;;  %v22_v7 = vld [vmem:[%s379_s0 + $0x38] sm:$0xff]  ;;  %273 = vset.pattern.permute.xlu1 %v279_v50  ;;  %275 = vset.pattern.permute.xlu0 %v280_v51 }
   0x3   :  { %v254_v4 = vpack.c.bf16 %v20_v1, %v16_v0  ;;  %v256_v8 = vpack.c.bf16 %v19_v5, %v15_v2  ;;  %v262_v9 = vpack.c.bf16 %v22_v7, %v18_v6  ;;  %v17_v10 = vld [vmem:[%s379_s0 + $0x10] sm:$0xff]  ;;  %v24_v12 = vld [vmem:[%s379_s0 + $0x48] sm:$0xff]  ;;  %v23_v15 = vld [vmem:[%s379_s0 + $0x40] sm:$0xff] }
   0x4   :  { %v21_v11 = vld [vmem:[%s379_s0 + $0x30] sm:$0xff]  ;;  %v28_v14 = vld [vmem:[%s379_s0 + $0x68] sm:$0xff]  ;;  %v27_v16 = vld [vmem:[%s379_s0 + $0x60] sm:$0xff] }
   0x5   :  { %255 = vmatprep.subr.bf16.mxu0 %v254_v4  ;;  %v264_v13 = vpack.c.bf16 %v21_v11, %v17_v10  ;;  %263 = vmatprep.subr.bf16.mxu1 %v262_v9  ;;  %v258_v17 = vpack.c.bf16 %v28_v14, %v24_v12  ;;  %v260_v18 = vpack.c.bf16 %v27_v16, %v23_v15  ;;  %v26_v19 = vld [vmem:[%s379_s0 + $0x58] sm:$0xff]  ;;  %v25_v21 = vld [vmem:[%s379_s0 + $0x50] sm:$0xff]  ;;  %v32_v25 = vld [vmem:[%s379_s0 + $0x88] sm:$0xf] }
   0x6   :  { %257 = vmatpush1.bf16.msra.mxu0 %v256_v8  ;;  %v30_v20 = vld [vmem:[%s379_s0 + $0x78] sm:$0xff]  ;;  %v29_v23 = vld [vmem:[%s379_s0 + $0x70] sm:$0xff]  ;;  %v31_v27 = vld [vmem:[%s379_s0 + $0x80] sm:$0xf] }
   0x7   :  { %265 = vmatpush1.bf16.msra.mxu1 %v264_v13  ;;  %v266_v22 = vpack.c.bf16 %v30_v20, %v26_v19  ;;  %259 = vmatprep.subr.bf16.mxu0 %v258_v17  ;;  %v268_v24 = vpack.c.bf16 %v29_v23, %v25_v21  ;;  %v34_v26 = vld [vmem:[%s379_s0 + $0x98] sm:$0xf]  ;;  %v14_v28 = vld [vmem:[%s380_s1] sm:$0xff]  ;;  %v33_v29 = vld [vmem:[%s379_s0 + $0x90] sm:$0xf] }
   0x8   :  { %v214_v55 = vld [vmem:[%s381_s2] sm:$0xff] }
   0x9   :  { %267 = vmatprep.subr.bf16.mxu1 %v266_v22 }
   0xa   :  { %261 = vmatpush1.bf16.msra.mxu0 %v260_v18 }
   0xb   :  { %269 = vmatpush1.bf16.msra.mxu1 %v268_v24  ;;  %248 = vmatprep.subr.msk.mxu0 %vm39_vm0, %v32_v25 }
   0xc   :  { %251 = vmatprep.subr.msk.mxu1 %vm39_vm0, %v34_v26 }
   0xe   :  { %249 = vmatpush1.msk.msra.mxu0 %vm39_vm0, %v31_v27 }
   0xf   :  { %250 = vmatmul.mubr.msk.f32.vlgmr.msra.gmra.mrb[0].mxu0 %vm35_vm1, %v14_v28  ;;  %252 = vmatpush1.msk.msra.mxu1 %vm39_vm0, %v33_v29 }
  0x10   :  { %253 = vmatmul.mubr.msk.f32.vlgmr.msra.gmra.mrb[0].mxu1 %vm35_vm1, %v14_v28 }
  0xe2   :  { %v118_v30 = vpop.f32.mrb[0].mxu0 }
  0xe3   :  { %v120_v31 = vpop.f32.mrb[1].mxu0  ;;  %v189_v32 = vpop.f32.mrb[0].mxu1 }
  0xe4   :  { %v194_v33 = vadd.f32 %v120_v31, %v118_v30  ;;  %v191_v34 = vpop.f32.mrb[1].mxu1 }
  0xe6   :  { %v195_v35 = vadd.f32 %v194_v33, %v189_v32 }
  0xe8   :  { %v196_v36 = vadd.f32 %v195_v35, %v191_v34 }
  0xea   :  { %197 = vadd.xlane.f32.xlu0 %v196_v36 }
 0x177   :  { %v198_v37 = vpop.xlane.xlu0 %197 }
 0x178   :  { %v199_v38 = vmul.f32 0.001953125, %v198_v37 }
 0x17a   :  { %v200_v39 = vsub.f32 %v118_v30, %v199_v38  ;;  %v201_v40 = vsub.f32 %v120_v31, %v199_v38  ;;  %v202_v41 = vsub.f32 %v189_v32, %v199_v38  ;;  %v203_v42 = vsub.f32 %v191_v34, %v199_v38 }
 0x17c   :  { %v204_v43 = vmul.f32 %v200_v39, %v200_v39  ;;  %v205_v44 = vmul.f32 %v201_v40, %v201_v40  ;;  %v206_v45 = vmul.f32 %v202_v41, %v202_v41  ;;  %v207_v47 = vmul.f32 %v203_v42, %v203_v42 }
 0x17e   :  { %v208_v46 = vadd.f32 %v205_v44, %v204_v43 }
 0x180   :  { %v209_v48 = vadd.f32 %v208_v46, %v206_v45 }
 0x182   :  { %v210_v49 = vadd.f32 %v209_v48, %v207_v47 }
 0x184   :  { %211 = vadd.xlane.f32.xlu0 %v210_v49 }
 0x211   :  { %v212_v52 = vpop.xlane.xlu0 %211 }
 0x212   :  { %v213_v53 = vmul.f32 0.001953125, %v212_v52 }
 0x214   :  { %v215_v54 = vadd.f32 1e-05, %v213_v53 }
 0x216   :  { %276 = vrsqrt.f32 %v215_v54 }
 0x220   :  { %v277_v56 = vpop.eup %276 }
 0x221   :  { %v217_v57 = vmul.f32 %v277_v56, %v214_v55 }
 0x223   :  { %220 = vperm.xlu1 %273, %v217_v57  }
 0x227   :  { %274 = vset.pattern.permute.xlu1 %v280_v51 }
 0x228   :  { %229 = vperm.xlu1 %274, %v214_v55  }
 0x2a2   :  { %v221_v58 = vpop.permute.xlu1 %220 }
 0x2a3   :  { %v223_v59 = vmul.f32 %v221_v58, %v200_v39  ;;  %v224_v60 = vmul.f32 %v221_v58, %v201_v40  ;;  %v225_v61 = vmul.f32 %v221_v58, %v202_v41  ;;  %v226_v62 = vmul.f32 %v221_v58, %v203_v42 }
 0x2a7   :  { %v230_v63 = vpop.permute.xlu1 %229 }
 0x2a8   :  { %v232_v0 = vadd.f32 %v230_v63, %v223_v59  ;;  %v233_v1 = vadd.f32 %v230_v63, %v224_v60  ;;  %v234_v2 = vadd.f32 %v230_v63, %v225_v61  ;;  %v235_v3 = vadd.f32 %v230_v63, %v226_v62 }
 0x2aa   :  { %v236_v4 = vmax.f32 %v232_v0, 0.0  ;;  %v237_v5 = vmax.f32 %v233_v1, 0.0  ;;  %v238_v6 = vmax.f32 %v234_v2, 0.0  ;;  %v239_v7 = vmax.f32 %v235_v3, 0.0 }
 0x2ac   :  { %240 = vst [vmem:[%s382_s3] sm:$0xff] %v236_v4  ;;  %241 = vst [vmem:[%s382_s3 + $0x8] sm:$0xff] %v237_v5 }
 0x2ad   :  { %242 = vst [vmem:[%s382_s3 + $0x10] sm:$0xff] %v238_v6  ;;  %243 = vst [vmem:[%s382_s3 + $0x18] sm:$0xff] %v239_v7 }

</bundles_post_ra>
